<compile_context>
chip_gen: v5e
topology: v5e:2x2
jax: 0.10.0
libtpu: 0.0.40
codegen_flags: <defaults>
</compile_context>

<pallas_src>
import functools
import math

import jax
import jax.numpy as jnp
from jax.experimental import pallas as pl
from jax.experimental.pallas import tpu as pltpu

_LANES = 128


def _largest_divisor_leq(n, cap):
    cap = max(1, min(n, cap))
    for c in range(cap, 0, -1):
        if n % c == 0:
            return c
    return 1


def _allowed_tbs(B):
    """Batch-tile sizes whose (tb, D) output block obeys the (8, 128) rule:
    tb must be a multiple of 8 (sublane aligned) or equal to the full batch B."""
    tbs = [d for d in range(8, B, 8) if B % d == 0]
    tbs.append(B)
    return tbs


def _vmem_capacity_bytes():
    try:
        return int(pltpu.get_tpu_info().vmem_capacity_bytes)
    except Exception:
        return 64 * 1024 * 1024  # conservative default (v7x per-TensorCore VMEM)


def _tsdp_single_kernel(x_ref, o_ref, *, inv_t, inv_tm1, eps):
    """Whole time axis in one tile: exact two-pass mean/variance (stable)."""
    x = x_ref[...].astype(jnp.float32)
    mean = jnp.sum(x, axis=-1, keepdims=True) * inv_t
    d = x - mean
    var = jnp.sum(d * d, axis=-1) * inv_tm1
    o_ref[...] = jnp.sqrt(var + eps).astype(o_ref.dtype)


def _tsdp_multi_kernel(x_ref, o_ref, m0_ref, s_ref, ss_ref, *,
                       tt, inv_t, inv_tm1, eps):
    """T tiled: lane-wise (tb, D, 128) f32 accumulation of (x - m0) and (x - m0)^2.

    Steady-state work per grid step is pure vld + VPU adds; the single XLU reduce,
    variance formula and sqrt run only once per batch block in the finalize.
    """
    k = pl.program_id(1)

    @pl.when(k == 0)
    def _init():
        x0 = x_ref[...].astype(jnp.float32)
        # Shift constant for numerical stability: Var(x) == Var(x - c) for any c.
        m0 = jnp.mean(x0, axis=-1, keepdims=True)
        m0_ref[...] = jnp.broadcast_to(m0, m0_ref.shape)
        s_ref[...] = jnp.zeros_like(s_ref)
        ss_ref[...] = jnp.zeros_like(ss_ref)

    x = x_ref[...].astype(jnp.float32)
    m0 = m0_ref[...]
    s = s_ref[...]
    ss = ss_ref[...]
    for c in range(tt // _LANES):  # static unroll: lane-aligned slices, pure VPU
        d = x[:, :, c * _LANES:(c + 1) * _LANES] - m0
        s = s + d
        ss = ss + d * d
    s_ref[...] = s
    ss_ref[...] = ss

    @pl.when(k == pl.num_programs(1) - 1)
    def _finalize():
        S = jnp.sum(s_ref[...], axis=-1)    # one XLU reduce per batch block
        SS = jnp.sum(ss_ref[...], axis=-1)
        var = (SS - S * S * inv_t) * inv_tm1
        var = jnp.maximum(var, 0.0)         # guard cancellation-induced negatives
        o_ref[...] = jnp.sqrt(var + eps).astype(o_ref.dtype)


def tsdp(x, *, tb=None, tt=None):
    """Temporal std pooling: x (B, ..., T) -> (B, prod(middle dims)).

    Matches sqrt(torch.var(x, dim=-1) + 1e-7).flatten(start_dim=1).
    Note: T == 1 yields NaN (torch's unbiased var of a single sample), by design.
    """
    assert x.ndim >= 3, x.shape
    B = x.shape[0]
    T = x.shape[-1]
    D = math.prod(x.shape[1:-1])
    x3 = x.reshape(B, D, T)
    itemsize = jnp.dtype(x.dtype).itemsize

    # ---- generation-aware VMEM budget -------------------------------------
    cap = _vmem_capacity_bytes()                      # 128 MiB v5e/v6e, 64 MiB v7x
    vmem_limit = max(16 * 1024 * 1024, min((3 * cap) // 4, 96 * 1024 * 1024))
    input_budget = vmem_limit // 3                    # per input buffer (x2 double-buffered)

    tbs = sorted(_allowed_tbs(B))

    # ---- pick tt first: full T if it fits, else the largest 128-multiple divisor ----
    if tt is None:
        base_tb = tbs[0]
        max_tt = max(1, input_budget // (base_tb * D * itemsize))
        if T <= max_tt or T % _LANES != 0:
            # TODO(synk): if T is huge and not 128-divisible this takes the full-T
            # tile anyway (correct, but may need a larger vmem limit).
            tt = T
        else:
            tt = _LANES * _largest_divisor_leq(T // _LANES, max(1, max_tt // _LANES))
    assert T % tt == 0, (T, tt)
    multi = tt < T
    if multi:
        assert tt % _LANES == 0, (tt, "partial time tiles must be lane (128) aligned")

    # ---- then pick tb: as big as the budget allows, keep >= 2 batch blocks ----
    if tb is None:
        max_tb = max(1, input_budget // (D * tt * itemsize))
        if multi:
            # bound the three lane-wise f32 accumulators (m0, sum, sumsq)
            max_tb = min(max_tb, max(1, (6 * 1024 * 1024) // (3 * D * _LANES * 4)))
        max_tb = min(max_tb, 64)
        cands = [t for t in tbs if t <= max_tb and B // t >= 2]   # megacore-friendly
        if not cands:
            cands = [t for t in tbs if t <= max_tb]
        tb = max(cands) if cands else tbs[0]
    assert B % tb == 0, (B, tb)

    inv_t = 1.0 / T
    inv_tm1 = 1.0 / (T - 1) if T > 1 else float("nan")
    eps = 1e-7

    cost = pl.CostEstimate(
        flops=3 * B * D * T,
        transcendentals=B * D,
        bytes_accessed=B * D * T * itemsize + B * D * itemsize,
    )

    if not multi:
        kernel = functools.partial(_tsdp_single_kernel,
                                   inv_t=inv_t, inv_tm1=inv_tm1, eps=eps)
        return pl.pallas_call(
            kernel,
            out_shape=jax.ShapeDtypeStruct((B, D), x.dtype),
            grid=(B // tb,),
            in_specs=[pl.BlockSpec((tb, D, T), lambda b: (b, 0, 0))],
            out_specs=pl.BlockSpec((tb, D), lambda b: (b, 0)),
            compiler_params=pltpu.CompilerParams(
                dimension_semantics=("parallel",),
                vmem_limit_bytes=vmem_limit,
            ),
            cost_estimate=cost,
        )(x3)

    kernel = functools.partial(_tsdp_multi_kernel,
                               tt=tt, inv_t=inv_t, inv_tm1=inv_tm1, eps=eps)
    return pl.pallas_call(
        kernel,
        out_shape=jax.ShapeDtypeStruct((B, D), x.dtype),
        grid=(B // tb, T // tt),
        in_specs=[pl.BlockSpec((tb, D, tt), lambda b, k: (b, 0, k))],
        out_specs=pl.BlockSpec((tb, D), lambda b, k: (b, 0)),
        scratch_shapes=[
            pltpu.VMEM((tb, D, _LANES), jnp.float32),  # shift (first-tile mean)
            pltpu.VMEM((tb, D, _LANES), jnp.float32),  # lane-wise running sum
            pltpu.VMEM((tb, D, _LANES), jnp.float32),  # lane-wise running sum of squares
        ],
        compiler_params=pltpu.CompilerParams(
            dimension_semantics=("parallel", "arbitrary"),
            vmem_limit_bytes=vmem_limit,
        ),
        cost_estimate=cost,
    )(x3)


if __name__ == "__main__":
    key = jax.random.PRNGKey(0)

    # Test 1: small shape -> single-step (two-pass) kernel path.
    B, D, T = 2, 32, 16
    x = jax.random.normal(key, (B, D, T), dtype=jnp.float32)
    out = jax.block_until_ready(tsdp(x))
    ref = jnp.sqrt(jnp.var(x, axis=-1, ddof=1) + 1e-7)
    assert out.shape == (B, D), out.shape
    assert jnp.allclose(out, ref, atol=1e-5, rtol=1e-5), float(
        jnp.max(jnp.abs(out - ref))
    )

    # Test 2: multi-step T reduction (lane-wise accumulators + shifted one-pass),
    # nonzero mean to exercise the cancellation-resistant path.
    k2 = jax.random.PRNGKey(1)
    B2, D2, T2 = 8, 64, 256
    x2 = 3.0 + jax.random.normal(k2, (B2, D2, T2), dtype=jnp.float32)
    out2 = jax.block_until_ready(tsdp(x2, tb=8, tt=128))
    ref2 = jnp.sqrt(jnp.var(x2, axis=-1, ddof=1) + 1e-7)
    assert out2.shape == (B2, D2), out2.shape
    assert jnp.allclose(out2, ref2, atol=1e-4, rtol=1e-4), float(
        jnp.max(jnp.abs(out2 - ref2))
    )

    print("KERNEL_OK")
</pallas_src>

<mosaic_0001>
module attributes {stable_mosaic.version = 11 : i64} {
  func.func @_tsdp_single_kernel(%arg0: i32, %arg1: memref<2x32x16xf32, #tpu.memory_space<vmem>>, %arg2: memref<2x32xf32, #tpu.memory_space<vmem>>) attributes {dimension_semantics = [#tpu.dimension_semantics<parallel>], iteration_bounds = array<i64: 1>, scalar_prefetch = 0 : i64, scratch_operands = 0 : i64, tpu.core_type = #tpu.core_type<tc>, window_params = [{transform_indices = @transform_0, window_bounds = array<i64: 2, 32, 16>}, {transform_indices = @transform_1, window_bounds = array<i64: 2, 32>}]} {
    %c0 = arith.constant 0 : index
    %c0_0 = arith.constant 0 : index
    %c0_1 = arith.constant 0 : index
    %0 = vector.load %arg1[%c0, %c0_0, %c0_1] : memref<2x32x16xf32, #tpu.memory_space<vmem>>, vector<2x32x16xf32>
    %cst = arith.constant dense<0.000000e+00> : vector<2x32xf32>
    %1 = vector.multi_reduction <add>, %0, %cst [2] : vector<2x32x16xf32> to vector<2x32xf32>
    %2 = vector.shape_cast %1 : vector<2x32xf32> to vector<2x32x1xf32>
    %cst_2 = arith.constant 6.250000e-02 : f32
    %3 = vector.broadcast %cst_2 : f32 to vector<2x32x1xf32>
    %4 = arith.mulf %2, %3 : vector<2x32x1xf32>
    %5 = vector.broadcast %4 : vector<2x32x1xf32> to vector<2x32x16xf32>
    %6 = arith.subf %0, %5 : vector<2x32x16xf32>
    %7 = arith.mulf %6, %6 : vector<2x32x16xf32>
    %cst_3 = arith.constant dense<0.000000e+00> : vector<2x32xf32>
    %8 = vector.multi_reduction <add>, %7, %cst_3 [2] : vector<2x32x16xf32> to vector<2x32xf32>
    %cst_4 = arith.constant 0.0666666701 : f32
    %9 = vector.broadcast %cst_4 : f32 to vector<2x32xf32>
    %10 = arith.mulf %8, %9 : vector<2x32xf32>
    %cst_5 = arith.constant 1.000000e-07 : f32
    %11 = vector.broadcast %cst_5 : f32 to vector<2x32xf32>
    %12 = arith.addf %10, %11 : vector<2x32xf32>
    %13 = math.sqrt %12 : vector<2x32xf32>
    %c0_6 = arith.constant 0 : index
    %c0_7 = arith.constant 0 : index
    %14 = vector.load %arg2[%c0_6, %c0_7] : memref<2x32xf32, #tpu.memory_space<vmem>>, vector<2x32xf32>
    tpu.vector_store %arg2[%c0_6, %c0_7], %13 {strides = array<i32>} : memref<2x32xf32, #tpu.memory_space<vmem>>, vector<2x32xf32>,
    return
  }
  func.func @transform_0(%arg0: i32) -> (i32, i32, i32) {
    %c0_i32 = arith.constant 0 : i32
    %c0_i32_0 = arith.constant 0 : i32
    %c0_i32_1 = arith.constant 0 : i32
    return %arg0, %c0_i32, %c0_i32_0 : i32, i32, i32
  }
  func.func @transform_1(%arg0: i32) -> (i32, i32) {
    %c0_i32 = arith.constant 0 : i32
    %c0_i32_0 = arith.constant 0 : i32
    return %arg0, %c0_i32 : i32, i32
  }
}

</mosaic_0001>

<bundles_post_ra>
// kernel: tpu_custom_call.1
= control target key start
LH: loop header
LB: loop body
LE: loop exit
PB: predicated region body
PF: predicated region fallthrough
CT: control target
= control target key end

     0   :  { %vm17_vm0 = vcmask 130048   ;;  %s461_s0 = inlined_call_operand.vmem [shape: f32[2,32,16], index: 0, kind: input, shape index: {}]   ;;  %s462_s1 = inlined_call_operand.hbm [shape: f32[2,32], index: 1, kind: output, shape index: {}]  }
   0x1   :  { %v13_v0 = vld [vmem:[%s461_s0 + $0x20] sm:$0xff]  ;;  %v11_v1 = vld [vmem:[%s461_s0 + $0x10] sm:$0xff] }
   0x2   :  { %v9_v2 = vld [vmem:[%s461_s0] sm:$0xff]  ;;  %v30_v3 = vsel %vm17_vm0, %v13_v0, 0.0  ;;  %v24_v4 = vsel %vm17_vm0, %v11_v1, 0.0 }
   0x3   :  { %v18_v5 = vsel %vm17_vm0, %v9_v2, 0.0  ;;  %31 = vadd.xlane.f32.xlu1 %v30_v3  ;;  %25 = vadd.xlane.f32.xlu2 %v24_v4 }
   0x4   :  { %19 = vadd.xlane.f32.xlu0 %v18_v5 }
   0x5   :  { %6 = vsyncpa [#allocation3], 0  ;;  %v14_v6 = vld [vmem:[%s461_s0 + $0x28] sm:$0xff]  ;;  %v15_v7 = vld [vmem:[%s461_s0 + $0x30] sm:$0xff]  ;;  %vm215_vm15 = vcmask 130112   ;;  %s244_s25 = sshll.u32 %s462_s1, 4  ;;  %s245_s25 = int_to_ptr.hbm [resolvable:$true] %s244_s25 }
   0x6   :  { %v10_v8 = vld [vmem:[%s461_s0 + $0x8] sm:$0xff]  ;;  %v33_v9 = vsel %vm17_vm0, %v14_v6, 0.0  ;;  %v36_v10 = vsel %vm17_vm0, %v15_v7, 0.0  ;;  %v16_v12 = vld [vmem:[%s461_s0 + $0x38] sm:$0xff] }
   0x7   :  { %v21_v11 = vsel %vm17_vm0, %v10_v8, 0.0  ;;  %v12_v13 = vld [vmem:[%s461_s0 + $0x18] sm:$0xff]  ;;  %v39_v14 = vsel %vm17_vm0, %v16_v12, 0.0  ;;  %s296_s0 = smov [#allocation2]  }
   0x8   :  { %v27_v15 = vsel %vm17_vm0, %v12_v13, 0.0  ;;  %s242_s22 = sshll.u32 %s296_s0, 4  ;;  %s243_s22 = int_to_ptr.vmem [resolvable:$true] %s242_s22 }
   0xb   :  { %34 = vadd.xlane.f32.xlu1 %v33_v9  ;;  %37 = vadd.xlane.f32.xlu2 %v36_v10 }
   0xc   :  { %22 = vadd.xlane.f32.xlu0 %v21_v11 }
  0x13   :  { %40 = vadd.xlane.f32.xlu1 %v39_v14 }
  0x14   :  { %28 = vadd.xlane.f32.xlu0 %v27_v15 }
  0x76   :  { %v32_v16 = vpop.xlane.xlu1 %31  ;;  %v26_v17 = vpop.xlane.xlu2 %25 }
  0x77   :  { %v46_v18 = vmul.f32 0.0625, %v32_v16  ;;  %v20_v19 = vpop.xlane.xlu0 %19  ;;  %v44_v32 = vmul.f32 0.0625, %v26_v17 }
  0x78   :  { %v42_v20 = vmul.f32 0.0625, %v20_v19 }
  0x79   :  { %v54_v21 = vsub.f32 %v13_v0, %v46_v18  ;;  %v52_v39 = vsub.f32 %v11_v1, %v44_v32 }
  0x7a   :  { %v50_v22 = vsub.f32 %v9_v2, %v42_v20 }
  0x7b   :  { %v62_v23 = vmul.f32 %v54_v21, %v54_v21  ;;  %v60_v48 = vmul.f32 %v52_v39, %v52_v39 }
  0x7c   :  { %v58_v24 = vmul.f32 %v50_v22, %v50_v22 }
  0x7d   :  { %v78_v25 = vsel %vm17_vm0, %v62_v23, 0.0  ;;  %v72_v51 = vsel %vm17_vm0, %v60_v48, 0.0 }
  0x7e   :  { %79 = vadd.xlane.f32.xlu1 %v78_v25  ;;  %v35_v26 = vpop.xlane.xlu1 %34  ;;  %v38_v27 = vpop.xlane.xlu2 %37  ;;  %v66_v28 = vsel %vm17_vm0, %v58_v24, 0.0 }
  0x7f   :  { %v47_v29 = vmul.f32 0.0625, %v35_v26  ;;  %v48_v30 = vmul.f32 0.0625, %v38_v27  ;;  %67 = vadd.xlane.f32.xlu2 %v66_v28  ;;  %v23_v31 = vpop.xlane.xlu0 %22  ;;  %v210_v27 = vlaneseq }
  0x80   :  { %v43_v33 = vmul.f32 0.0625, %v23_v31 }
  0x81   :  { %v55_v34 = vsub.f32 %v14_v6, %v47_v29  ;;  %v56_v35 = vsub.f32 %v15_v7, %v48_v30 }
  0x82   :  { %v51_v36 = vsub.f32 %v10_v8, %v43_v33 }
  0x83   :  { %v64_v37 = vmul.f32 %v56_v35, %v56_v35  ;;  %v63_v38 = vmul.f32 %v55_v34, %v55_v34 }
  0x84   :  { %v59_v40 = vmul.f32 %v51_v36, %v51_v36 }
  0x85   :  { %v84_v41 = vsel %vm17_vm0, %v64_v37, 0.0  ;;  %v81_v42 = vsel %vm17_vm0, %v63_v38, 0.0 }
  0x86   :  { %85 = vadd.xlane.f32.xlu1 %v84_v41  ;;  %v69_v43 = vsel %vm17_vm0, %v59_v40, 0.0  ;;  %v41_v44 = vpop.xlane.xlu1 %40  ;;  %v375_v40 = vand.u32 127, %v210_v27 }
  0x87   :  { %82 = vadd.xlane.f32.xlu2 %v81_v42  ;;  %70 = vadd.xlane.f32.xlu0 %v69_v43  ;;  %v29_v45 = vpop.xlane.xlu0 %28  ;;  %v49_v47 = vmul.f32 0.0625, %v41_v44 }
  0x88   :  { %v45_v46 = vmul.f32 0.0625, %v29_v45 }
  0x89   :  { %v57_v50 = vsub.f32 %v16_v12, %v49_v47  ;;  %v381_v47 = vadd.s32 4294967288, %v375_v40 }
  0x8a   :  { %v53_v49 = vsub.f32 %v12_v13, %v45_v46 }
  0x8b   :  { %v65_v54 = vmul.f32 %v57_v50, %v57_v50 }
  0x8c   :  { %v61_v52 = vmul.f32 %v53_v49, %v53_v49 }
  0x8d   :  { %v87_v55 = vsel %vm17_vm0, %v65_v54, 0.0 }
  0x8e   :  { %v75_v53 = vsel %vm17_vm0, %v61_v52, 0.0  ;;  %vm219_vm0 = vcmask 195712  }
  0x8f   :  { %73 = vadd.xlane.f32.xlu0 %v72_v51  ;;  %76 = vadd.xlane.f32.xlu2 %v75_v53  ;;  %v384_v51 = vadd.s32 4294967280, %v375_v40 }
  0x97   :  { %88 = vadd.xlane.f32.xlu0 %v87_v55 }
  0xf1   :  { %v80_v56 = vpop.xlane.xlu1 %79 }
  0xf2   :  { %v94_v57 = vmul.f32 0.06666667, %v80_v56  ;;  %v68_v58 = vpop.xlane.xlu2 %67 }
  0xf3   :  { %v90_v59 = vmul.f32 0.06666667, %v68_v58 }
  0xf4   :  { %v347_v60 = vadd.f32 1e-07, %v94_v57 }
  0xf5   :  { %v349_v61 = vadd.f32 1e-07, %v90_v59 }
  0xf6   :  { %254 = vrsqrt.f32 %v347_v60  ;;  %vm161_vm2 = vcmp.eq.f32.partialorder %v347_v60, inf  ;;  %v164_v53 = vand.u32 2147483648, %v347_v60  ;;  %vm163_vm6 = vcmp.eq.f32.partialorder %v347_v60, 0.0 }
  0xf7   :  { %256 = vrsqrt.f32 %v349_v61  ;;  %vm113_vm1 = vcmp.eq.f32.partialorder %v349_v61, inf  ;;  %v116_v55 = vand.u32 2147483648, %v349_v61  ;;  %vm115_vm4 = vcmp.eq.f32.partialorder %v349_v61, 0.0 }
  0xf9   :  { %v86_v62 = vpop.xlane.xlu1 %85 }
  0xfa   :  { %v96_v63 = vmul.f32 0.06666667, %v86_v62  ;;  %v83_v0 = vpop.xlane.xlu2 %82  ;;  %v71_v1 = vpop.xlane.xlu0 %70  ;;  %v392_v62 = vadd.s32 4294967272, %v375_v40 }
  0xfb   :  { %v95_v2 = vmul.f32 0.06666667, %v83_v0  ;;  %v91_v3 = vmul.f32 0.06666667, %v71_v1 }
  0xfc   :  { %v353_v4 = vadd.f32 1e-07, %v96_v63  ;;  %v255_v7 = vpop.eup %254 }
  0xfd   :  { %v355_v5 = vadd.f32 1e-07, %v95_v2  ;;  %v357_v6 = vadd.f32 1e-07, %v91_v3  ;;  %v257_v8 = vpop.eup %256  ;;  %v155_v9 = vmul.f32 %v255_v7, %v347_v60 }
  0xfe   :  { %258 = vrsqrt.f32 %v353_v4  ;;  %v107_v10 = vmul.f32 %v257_v8, %v349_v61  ;;  %vm185_vm3 = vcmp.eq.f32.partialorder %v353_v4, inf  ;;  %vm187_vm9 = vcmp.eq.f32.partialorder %v353_v4, 0.0 }
  0xff   :  { %260 = vrsqrt.f32 %v355_v5  ;;  %v156_v20 = vmul.f32 %v255_v7, %v155_v9  ;;  %vm125_vm5 = vcmp.eq.f32.partialorder %v357_v6, inf  ;;  %vm127_vm7 = vcmp.eq.f32.partialorder %v357_v6, 0.0 }
 0x100   :  { %262 = vrsqrt.f32 %v357_v6  ;;  %v108_v21 = vmul.f32 %v257_v8, %v107_v10  ;;  %v128_v3 = vand.u32 2147483648, %v357_v6  ;;  %vm173_vm8 = vcmp.eq.f32.partialorder %v355_v5, inf }
 0x101   :  { %v157_v30 = vmul.f32 0.5, %v156_v20  ;;  %vm175_vm10 = vcmp.eq.f32.partialorder %v355_v5, 0.0 }
 0x102   :  { %v77_v11 = vpop.xlane.xlu2 %76  ;;  %v74_v12 = vpop.xlane.xlu0 %73  ;;  %v109_v29 = vmul.f32 0.5, %v108_v21 }
 0x103   :  { %v93_v13 = vmul.f32 0.06666667, %v77_v11  ;;  %v92_v14 = vmul.f32 0.06666667, %v74_v12  ;;  %v158_v44 = vsub.f32 1.5, %v157_v30 }
 0x104   :  { %v259_v15 = vpop.eup %258  ;;  %v110_v43 = vsub.f32 1.5, %v109_v29 }
 0x105   :  { %v261_v16 = vpop.eup %260  ;;  %v364_v17 = vadd.f32 1e-07, %v93_v13  ;;  %v366_v18 = vadd.f32 1e-07, %v92_v14  ;;  %v179_v22 = vmul.f32 %v259_v15, %v353_v4  ;;  %v159_v57 = vmul.f32 %v255_v7, %v158_v44 }
 0x106   :  { %v263_v19 = vpop.eup %262  ;;  %v167_v23 = vmul.f32 %v261_v16, %v355_v5  ;;  %v111_v54 = vmul.f32 %v257_v8, %v110_v43  ;;  %v176_v13 = vand.u32 2147483648, %v355_v5 }
 0x107   :  { %v119_v24 = vmul.f32 %v263_v19, %v357_v6  ;;  %264 = vrsqrt.f32 %v364_v17  ;;  %v180_v32 = vmul.f32 %v259_v15, %v179_v22  ;;  %v160_v11 = vmul.f32 %v159_v57, %v347_v60 }
 0x108   :  { %v168_v25 = vmul.f32 %v261_v16, %v167_v23  ;;  %266 = vrsqrt.f32 %v366_v18  ;;  %v112_v9 = vmul.f32 %v111_v54, %v349_v61  ;;  %vm137_vm11 = vcmp.eq.f32.partialorder %v366_v18, inf }
 0x109   :  { %v120_v26 = vmul.f32 %v263_v19, %v119_v24  ;;  %v181_v36 = vmul.f32 0.5, %v180_v32  ;;  %vm139_vm12 = vcmp.eq.f32.partialorder %v366_v18, 0.0  ;;  %v140_v22 = vand.u32 2147483648, %v366_v18 }
 0x10a   :  { %v89_v28 = vpop.xlane.xlu0 %88  ;;  %v169_v31 = vmul.f32 0.5, %v168_v25  ;;  %v114_v23 = vsel %vm113_vm1, %v349_v61, %v112_v9  ;;  %vm149_vm13 = vcmp.eq.f32.partialorder %v364_v17, inf  ;;  %v162_v24 = vsel %vm161_vm2, %v347_v60, %v160_v11 }
 0x10b   :  { %v97_v33 = vmul.f32 0.06666667, %v89_v28  ;;  %v121_v34 = vmul.f32 0.5, %v120_v26  ;;  %v182_v46 = vsub.f32 1.5, %v181_v36  ;;  %v188_v32 = vand.u32 2147483648, %v353_v4 }
 0x10c   :  { %v170_v35 = vsub.f32 1.5, %v169_v31  ;;  %vm151_vm14 = vcmp.eq.f32.partialorder %v364_v17, 0.0 }
 0x10d   :  { %v265_v37 = vpop.eup %264  ;;  %v373_v38 = vadd.f32 1e-07, %v97_v33  ;;  %v122_v39 = vsub.f32 1.5, %v121_v34  ;;  %v183_v59 = vmul.f32 %v259_v15, %v182_v46  ;;  %v117_v34 = vsel %vm115_vm4, %v116_v55, %v114_v23 }
 0x10e   :  { %v267_v41 = vpop.eup %266  ;;  %v143_v42 = vmul.f32 %v265_v37, %v364_v17  ;;  %v171_v50 = vmul.f32 %v261_v16, %v170_v35  ;;  %vm232_vm4 = vcmask 1041409  }
 0x10f   :  { %v131_v45 = vmul.f32 %v267_v41, %v366_v18  ;;  %268 = vrsqrt.f32 %v373_v38  ;;  %v123_v48 = vmul.f32 %v263_v19, %v122_v39  ;;  %v184_v14 = vmul.f32 %v183_v59, %v353_v4 }
 0x110   :  { %v144_v49 = vmul.f32 %v265_v37, %v143_v42  ;;  %v172_v1 = vmul.f32 %v171_v50, %v355_v5  ;;  %v212_v42 = vperm.slane %v117_v34, %v375_v40  ;;  %vm197_vm1 = vcmp.eq.f32.partialorder %v373_v38, inf }
 0x111   :  { %v132_v52 = vmul.f32 %v267_v41, %v131_v45  ;;  %v124_v63 = vmul.f32 %v123_v48, %v357_v6  ;;  %v186_v29 = vsel %vm185_vm3, %v353_v4, %v184_v14  ;;  %vm199_vm2 = vcmp.eq.f32.partialorder %v373_v38, 0.0 }
 0x112   :  { %v145_v56 = vmul.f32 0.5, %v144_v49  ;;  %v174_v19 = vsel %vm173_vm8, %v355_v5, %v172_v1  ;;  %v165_v5 = vsel %vm163_vm6, %v164_v53, %v162_v24  ;;  %v200_v4 = vand.u32 2147483648, %v373_v38 }
 0x113   :  { %v133_v58 = vmul.f32 0.5, %v132_v52  ;;  %v126_v15 = vsel %vm125_vm5, %v357_v6, %v124_v63  ;;  %v177_v28 = vsel %vm175_vm10, %v176_v13, %v174_v19  ;;  %v152_v6 = vand.u32 2147483648, %v364_v17 }
 0x114   :  { %v146_v0 = vsub.f32 1.5, %v145_v56  ;;  %v129_v26 = vsel %vm127_vm7, %v128_v3, %v126_v15  ;;  %v225_v60 = vperm.slane %v165_v5, %v375_v40  ;;  %vm223_vm3 = vcmask 261312  }
 0x115   :  { %v269_v2 = vpop.eup %268  ;;  %v134_v7 = vsub.f32 1.5, %v133_v58  ;;  %v214_v36 = vperm.slane %v129_v26, %v381_v47  ;;  %vm235_vm5 = vcmask 254976  }
 0x116   :  { %v191_v8 = vmul.f32 %v269_v2, %v373_v38  ;;  %v147_v10 = vmul.f32 %v265_v37, %v146_v0  ;;  %v226_v37 = vperm.slane %v177_v28, %v381_v47 }
 0x117   :  { %v135_v12 = vmul.f32 %v267_v41, %v134_v7  ;;  %v216_v44 = vsel %vm215_vm15, %v214_v36, %v212_v42 }
 0x118   :  { %v148_v16 = vmul.f32 %v147_v10, %v364_v17  ;;  %v192_v20 = vmul.f32 %v269_v2, %v191_v8  ;;  %v227_v46 = vsel %vm215_vm15, %v226_v37, %v225_v60 }
 0x119   :  { %v136_v21 = vmul.f32 %v135_v12, %v366_v18 }
 0x11a   :  { %v193_v25 = vmul.f32 0.5, %v192_v20  ;;  %v150_v31 = vsel %vm149_vm13, %v364_v17, %v148_v16 }
 0x11b   :  { %v138_v27 = vsel %vm137_vm11, %v366_v18, %v136_v21  ;;  %v189_v18 = vsel %vm187_vm9, %v188_v32, %v186_v29  ;;  %v153_v39 = vsel %vm151_vm14, %v152_v6, %v150_v31 }
 0x11c   :  { %v141_v30 = vsel %vm139_vm12, %v140_v22, %v138_v27  ;;  %v194_v33 = vsub.f32 1.5, %v193_v25  ;;  %v228_v17 = vperm.slane %v189_v18, %v384_v51  ;;  %v222_v45 = vperm.slane %v153_v39, %v392_v62 }
 0x11d   :  { %v218_v61 = vperm.slane %v141_v30, %v384_v51 }
 0x11e   :  { %v195_v35 = vmul.f32 %v269_v2, %v194_v33  ;;  %v229_v49 = vsel %vm219_vm0, %v228_v17, %v227_v46 }
 0x11f   :  { %v220_v48 = vsel %vm219_vm0, %v218_v61, %v216_v44 }
 0x120   :  { %v196_v41 = vmul.f32 %v195_v35, %v373_v38 }
 0x122   :  { %v198_v43 = vsel %vm197_vm1, %v373_v38, %v196_v41  ;;  %v224_v38 = vsel %vm223_vm3, %v222_v45, %v220_v48 }
 0x123   :  { %v201_v47 = vsel %vm199_vm2, %v200_v4, %v198_v43 }
 0x124   :  { %v230_v40 = vperm.slane %v201_v47, %v392_v62 }
 0x126   :  { %v231_v50 = vsel %vm223_vm3, %v230_v40, %v229_v49 }
 0x127   :  { %v233_v51 = vsel %vm232_vm4, %v231_v50, %v224_v38 }
 0x128   :  { %236 = vst.msk [vmem:[#allocation2] sm:$0x3] %vm235_vm5, %v233_v51 }
 0x129   :  { %247 = dma.vmem_to_hbm [thread:$0]  %s243_s22, 32, %s245_s25, [#allocation3]  }
 0x12a   :  { %294 = dma.done.wait [#allocation3], 32  }
 0x12b   :  { %295 = vsyncadd [#allocation3], 4294967264 }
 0x12c   :  { %252 = vsyncpa [#allocation3], 1 }

</bundles_post_ra>
